<compile_context>
chip_gen: v6e
topology: v6e:2x2x1
jax: 0.10.0
libtpu: 0.0.40
codegen_flags: <defaults>
</compile_context>

<pallas_src>
import functools

import jax
import jax.numpy as jnp
from jax.experimental import pallas as pl
from jax.experimental.pallas import tpu as pltpu


def _round_up(x, m):
    return (x + m - 1) // m * m


def _vmem_capacity_bytes():
    try:
        return int(pltpu.get_tpu_info().vmem_capacity_bytes)
    except Exception:
        return 64 << 20  # conservative: v7x per-TC VMEM


def flow_detector_kernel(x_ref, we_ref, be_ref, w1_ref, b1_ref, w2_ref, b2_ref,
                         y_ref, ld_ref, *, hp):
    cdt = we_ref.dtype                       # MXU operand dtype (bf16 or f32)
    x = x_ref[...].astype(cdt)

    # --- embedding: one fused (D_in, 2*hp) GEMM, split at the 128-lane boundary
    h = jnp.dot(x, we_ref[...], preferred_element_type=jnp.float32) + be_ref[...]
    h1 = h[:, :hp]
    h2 = h[:, hp:]

    # --- coupling net: Linear -> tanh -> Linear, s|t fused as one (mp, 2*hp) GEMM
    pre = (jnp.dot(h1.astype(cdt), w1_ref[...], preferred_element_type=jnp.float32)
           + b1_ref[...])
    mid = jnp.tanh(pre.astype(cdt))          # transcendental in compute dtype
    st = (jnp.dot(mid, w2_ref[...], preferred_element_type=jnp.float32)
          + b2_ref[...])
    s = jnp.tanh(st[:, :hp].astype(cdt))
    t = st[:, hp:]

    # --- single fused y output: [ h1 | h2*exp(s)+t ], lane-dense stores
    y_ref[:, :hp] = h1.astype(y_ref.dtype)
    y_ref[:, hp:] = (h2 * jnp.exp(s) + t).astype(y_ref.dtype)

    # log|det J| = sum of log-scales (padded s columns are exactly tanh(0) = 0)
    ld_ref[...] = jnp.sum(s.astype(jnp.float32), axis=-1,
                          keepdims=True).astype(ld_ref.dtype)


def flow_detector(x, params, *, tile_b=1024, compute_dtype=jnp.bfloat16):
    """x: [B, D_in] float32.  params: (we, be, w1, b1, w2, b2).

    Returns (y [B, H], log_det [B]).  compute_dtype is the MXU/EUP operand
    dtype (bf16 recommended on v5e/v6e/v7x MXUs; accumulation is always f32).
    """
    B, D_in = x.shape
    we, be, w1, b1, w2, b2 = params
    H = we.shape[1]
    assert H % 2 == 0, "hidden width must be even for the coupling split"
    half = H // 2

    hp = _round_up(half, 128)                # lane-aligned coupling half-width
    mp = _round_up(H, 128)                   # coupling-net mid width
    hp2 = 2 * hp
    cdt = jnp.dtype(compute_dtype)

    def pad2(a, rows, cols):
        return jnp.pad(a, ((0, rows - a.shape[0]), (0, cols - a.shape[1])))

    # --- fused + zero-padded weights (feature dims -> multiples of 128; the
    #     contraction dim D_in is left at its true size: full-dim blocks are legal)
    we_f = jnp.concatenate([pad2(we[:, :half], D_in, hp),
                            pad2(we[:, half:], D_in, hp)], axis=1).astype(cdt)
    be_f = jnp.concatenate([pad2(be[:, :half], 1, hp),
                            pad2(be[:, half:], 1, hp)], axis=1).astype(jnp.float32)
    w1_f = pad2(w1, hp, mp).astype(cdt)
    b1_f = pad2(b1, 1, mp).astype(jnp.float32)
    w2_f = jnp.concatenate([pad2(w2[:, :half], mp, hp),
                            pad2(w2[:, half:], mp, hp)], axis=1).astype(cdt)
    b2_f = jnp.concatenate([pad2(b2[:, :half], 1, hp),
                            pad2(b2[:, half:], 1, hp)], axis=1).astype(jnp.float32)
    weights = (we_f, be_f, w1_f, b1_f, w2_f, b2_f)

    # --- batch tile from VMEM remaining after resident weights + live temporaries
    wt_bytes = sum(int(w.size) * w.dtype.itemsize for w in weights)
    row_io = D_in * cdt.itemsize + hp2 * 4 + 4           # x row + y row + ld row
    row_live = (6 * hp + mp) * 4                         # h, st, s, exp(s), mid (f32)
    bytes_per_row = 2 * row_io + row_live                # I/O tiles double-buffered

    cap = _vmem_capacity_bytes()
    avail = cap - 2 * wt_bytes - (6 << 20)
    tb = max(8, min(_round_up(tile_b, 8),
                    (max(avail, 0) // max(bytes_per_row, 1)) // 8 * 8,
                    _round_up(B, 8)))
    B_pad = _round_up(B, tb)
    grid = (B_pad // tb,)

    vmem_limit = 2 * wt_bytes + tb * bytes_per_row + (2 << 20)
    vmem_limit = int(min(max(vmem_limit, 32 << 20), cap - (2 << 20)))

    xp = jnp.pad(x, ((0, B_pad - B), (0, 0))).astype(cdt)

    full2 = lambda i: (0, 0)                 # constant map: fetched once, resident
    kernel = functools.partial(flow_detector_kernel, hp=hp)

    y, ld = pl.pallas_call(
        kernel,
        out_shape=(
            jax.ShapeDtypeStruct((B_pad, hp2), jnp.float32),
            jax.ShapeDtypeStruct((B_pad, 1), jnp.float32),
        ),
        grid_spec=pltpu.PrefetchScalarGridSpec(
            num_scalar_prefetch=0,
            grid=grid,
            in_specs=[pl.BlockSpec((tb, D_in), lambda i: (i, 0))]
                     + [pl.BlockSpec(w.shape, full2) for w in weights],
            out_specs=[
                pl.BlockSpec((tb, hp2), lambda i: (i, 0)),
                pl.BlockSpec((tb, 1), lambda i: (i, 0)),
            ],
        ),
        compiler_params=pltpu.CompilerParams(
            dimension_semantics=("parallel",),
            vmem_limit_bytes=vmem_limit,
        ),
    )(xp, *weights)

    if hp == half:                           # lane-aligned hidden: un-pad is free
        y_out = y[:B]
    else:                                    # small/unaligned hidden: drop zero pad
        y_out = jnp.concatenate([y[:B, :half], y[:B, hp:hp + half]], axis=-1)
    return y_out, ld[:B, 0]


def init_params(key, d_in, hidden):
    """Deterministic synthetic parameter init (module shapes, no checkpoint)."""
    k = jax.random.split(key, 6)
    half = hidden // 2
    we = jax.random.normal(k[0], (d_in, hidden), jnp.float32) * (1.0 / jnp.sqrt(d_in))
    be = jax.random.normal(k[1], (1, hidden), jnp.float32) * 0.01
    w1 = jax.random.normal(k[2], (half, hidden), jnp.float32) * (1.0 / jnp.sqrt(half))
    b1 = jax.random.normal(k[3], (1, hidden), jnp.float32) * 0.01
    w2 = jax.random.normal(k[4], (hidden, hidden), jnp.float32) * (1.0 / jnp.sqrt(hidden))
    b2 = jax.random.normal(k[5], (1, hidden), jnp.float32) * 0.01
    return we, be, w1, b1, w2, b2


def flow_detector_ref(x, params):
    """Pure-JAX reference for correctness checking."""
    we, be, w1, b1, w2, b2 = params
    h = x @ we + be
    half = we.shape[1] // 2
    h1, h2 = h[:, :half], h[:, half:]
    mid = jnp.tanh(h1 @ w1 + b1)
    st = mid @ w2 + b2
    s = jnp.tanh(st[:, :half])
    t = st[:, half:]
    y = jnp.concatenate([h1, h2 * jnp.exp(s) + t], axis=-1)
    return y, jnp.sum(s, axis=-1)


if __name__ == "__main__":
    key = jax.random.PRNGKey(0)

    # Case 1: half == 128 (lane-aligned) -> fused y output needs no un-pad concat.
    # Case 2: half == 32  (small hidden) -> exercises the zero-padded path.
    for B, D_IN, HIDDEN in [(16, 32, 256), (16, 32, 64)]:
        kx, kp = jax.random.split(jax.random.fold_in(key, HIDDEN))
        x = jax.random.normal(kx, (B, D_IN), jnp.float32)
        params = init_params(kp, D_IN, HIDDEN)

        y_ref, ld_ref = flow_detector_ref(x, params)

        # f32 operand path: tight correctness check.
        y, ld = flow_detector(x, params, compute_dtype=jnp.float32)
        y, ld = jax.block_until_ready((y, ld))
        assert y.shape == (B, HIDDEN) and ld.shape == (B,)
        assert jnp.allclose(y, y_ref, atol=1e-4, rtol=1e-4)
        assert jnp.allclose(ld, ld_ref, atol=1e-4, rtol=1e-4)

        # bf16 operand path (default; best on v5e/v6e/v7x MXU): f32 accumulation,
        # lenient sanity check only (exp(s) amplifies bf16 error in s).
        y_bf, ld_bf = flow_detector(x, params)
        y_bf, ld_bf = jax.block_until_ready((y_bf, ld_bf))
        assert float(jnp.max(jnp.abs(y_bf - y_ref))) < 0.5
        assert float(jnp.max(jnp.abs(ld_bf - ld_ref))) < 0.5

    print("KERNEL_OK")
</pallas_src>

<mosaic_0001>
module attributes {stable_mosaic.version = 11 : i64} {
  func.func @flow_detector_kernel(%arg0: i32, %arg1: memref<16x32xf32, #tpu.memory_space<vmem>>, %arg2: memref<32x256xf32, #tpu.memory_space<vmem>>, %arg3: memref<1x256xf32, #tpu.memory_space<vmem>>, %arg4: memref<128x256xf32, #tpu.memory_space<vmem>>, %arg5: memref<1x256xf32, #tpu.memory_space<vmem>>, %arg6: memref<256x256xf32, #tpu.memory_space<vmem>>, %arg7: memref<1x256xf32, #tpu.memory_space<vmem>>, %arg8: memref<16x256xf32, #tpu.memory_space<vmem>>, %arg9: memref<16x1xf32, #tpu.memory_space<vmem>>) attributes {dimension_semantics = [#tpu.dimension_semantics<parallel>], iteration_bounds = array<i64: 1>, scalar_prefetch = 0 : i64, scratch_operands = 0 : i64, tpu.core_type = #tpu.core_type<tc>, window_params = [{transform_indices = @transform_0, window_bounds = array<i64: 16, 32>}, {pipeline_mode = #tpu.pipeline_mode<synchronous>, transform_indices = @transform_1, window_bounds = array<i64: 32, 256>}, {pipeline_mode = #tpu.pipeline_mode<synchronous>, transform_indices = @transform_2, window_bounds = array<i64: 1, 256>}, {pipeline_mode = #tpu.pipeline_mode<synchronous>, transform_indices = @transform_3, window_bounds = array<i64: 128, 256>}, {pipeline_mode = #tpu.pipeline_mode<synchronous>, transform_indices = @transform_4, window_bounds = array<i64: 1, 256>}, {pipeline_mode = #tpu.pipeline_mode<synchronous>, transform_indices = @transform_5, window_bounds = array<i64: 256, 256>}, {pipeline_mode = #tpu.pipeline_mode<synchronous>, transform_indices = @transform_6, window_bounds = array<i64: 1, 256>}, {transform_indices = @transform_7, window_bounds = array<i64: 16, 256>}, {transform_indices = @transform_8, window_bounds = array<i64: 16, 1>}]} {
    %c0 = arith.constant 0 : index
    %c0_0 = arith.constant 0 : index
    %0 = vector.load %arg1[%c0, %c0_0] : memref<16x32xf32, #tpu.memory_space<vmem>>, vector<16x32xf32>
    %c0_1 = arith.constant 0 : index
    %c0_2 = arith.constant 0 : index
    %1 = vector.load %arg2[%c0_1, %c0_2] : memref<32x256xf32, #tpu.memory_space<vmem>>, vector<32x256xf32>
    %cst = arith.constant dense<0.000000e+00> : vector<16x256xf32>
    %2 = tpu.matmul %0, %1, %cst {dimension_numbers = #tpu.dot_dimension_numbers<[1], [0], [0], [1], [0, 0, 1, 1], [], []>} : vector<16x32xf32>, vector<32x256xf32>, vector<16x256xf32> -> vector<16x256xf32>
    %c0_3 = arith.constant 0 : index
    %c0_4 = arith.constant 0 : index
    %3 = vector.load %arg3[%c0_3, %c0_4] : memref<1x256xf32, #tpu.memory_space<vmem>>, vector<1x256xf32>
    %4 = vector.broadcast %3 : vector<1x256xf32> to vector<16x256xf32>
    %5 = arith.addf %2, %4 : vector<16x256xf32>
    %6 = vector.extract_strided_slice %5 {offsets = [0, 0], sizes = [16, 128], strides = [1, 1]} : vector<16x256xf32> to vector<16x128xf32>
    %7 = vector.extract_strided_slice %5 {offsets = [0, 128], sizes = [16, 128], strides = [1, 1]} : vector<16x256xf32> to vector<16x128xf32>
    %c0_5 = arith.constant 0 : index
    %c0_6 = arith.constant 0 : index
    %8 = vector.load %arg4[%c0_5, %c0_6] : memref<128x256xf32, #tpu.memory_space<vmem>>, vector<128x256xf32>
    %cst_7 = arith.constant dense<0.000000e+00> : vector<16x256xf32>
    %9 = tpu.matmul %6, %8, %cst_7 {dimension_numbers = #tpu.dot_dimension_numbers<[1], [0], [0], [1], [0, 0, 1, 1], [], []>} : vector<16x128xf32>, vector<128x256xf32>, vector<16x256xf32> -> vector<16x256xf32>
    %c0_8 = arith.constant 0 : index
    %c0_9 = arith.constant 0 : index
    %10 = vector.load %arg5[%c0_8, %c0_9] : memref<1x256xf32, #tpu.memory_space<vmem>>, vector<1x256xf32>
    %11 = vector.broadcast %10 : vector<1x256xf32> to vector<16x256xf32>
    %12 = arith.addf %9, %11 : vector<16x256xf32>
    %13 = math.tanh %12 : vector<16x256xf32>
    %c0_10 = arith.constant 0 : index
    %c0_11 = arith.constant 0 : index
    %14 = vector.load %arg6[%c0_10, %c0_11] : memref<256x256xf32, #tpu.memory_space<vmem>>, vector<256x256xf32>
    %cst_12 = arith.constant dense<0.000000e+00> : vector<16x256xf32>
    %15 = tpu.matmul %13, %14, %cst_12 {dimension_numbers = #tpu.dot_dimension_numbers<[1], [0], [0], [1], [0, 0, 1, 1], [], []>} : vector<16x256xf32>, vector<256x256xf32>, vector<16x256xf32> -> vector<16x256xf32>
    %c0_13 = arith.constant 0 : index
    %c0_14 = arith.constant 0 : index
    %16 = vector.load %arg7[%c0_13, %c0_14] : memref<1x256xf32, #tpu.memory_space<vmem>>, vector<1x256xf32>
    %17 = vector.broadcast %16 : vector<1x256xf32> to vector<16x256xf32>
    %18 = arith.addf %15, %17 : vector<16x256xf32>
    %19 = vector.extract_strided_slice %18 {offsets = [0, 0], sizes = [16, 128], strides = [1, 1]} : vector<16x256xf32> to vector<16x128xf32>
    %20 = math.tanh %19 : vector<16x128xf32>
    %21 = vector.extract_strided_slice %18 {offsets = [0, 128], sizes = [16, 128], strides = [1, 1]} : vector<16x256xf32> to vector<16x128xf32>
    %c0_15 = arith.constant 0 : index
    %c0_16 = arith.constant 0 : index
    %22 = vector.load %arg8[%c0_15, %c0_16] : memref<16x256xf32, #tpu.memory_space<vmem>>, vector<16x128xf32>
    tpu.vector_store %arg8[%c0_15, %c0_16], %6 {strides = array<i32>} : memref<16x256xf32, #tpu.memory_space<vmem>>, vector<16x128xf32>,
    %23 = math.exp %20 : vector<16x128xf32>
    %24 = arith.mulf %7, %23 : vector<16x128xf32>
    %25 = arith.addf %24, %21 : vector<16x128xf32>
    %c0_17 = arith.constant 0 : index
    %c128 = arith.constant 128 : index
    %26 = vector.load %arg8[%c0_17, %c128] : memref<16x256xf32, #tpu.memory_space<vmem>>, vector<16x128xf32>
    tpu.vector_store %arg8[%c0_17, %c128], %25 {strides = array<i32>} : memref<16x256xf32, #tpu.memory_space<vmem>>, vector<16x128xf32>,
    %cst_18 = arith.constant dense<0.000000e+00> : vector<16xf32>
    %27 = vector.multi_reduction <add>, %20, %cst_18 [1] : vector<16x128xf32> to vector<16xf32>
    %28 = vector.shape_cast %27 : vector<16xf32> to vector<16x1xf32>
    %c0_19 = arith.constant 0 : index
    %c0_20 = arith.constant 0 : index
    %29 = vector.load %arg9[%c0_19, %c0_20] : memref<16x1xf32, #tpu.memory_space<vmem>>, vector<16x1xf32>
    tpu.vector_store %arg9[%c0_19, %c0_20], %28 {strides = array<i32>} : memref<16x1xf32, #tpu.memory_space<vmem>>, vector<16x1xf32>,
    return
  }
  func.func @transform_0(%arg0: i32) -> (i32, i32) {
    %c0_i32 = arith.constant 0 : i32
    %c0_i32_0 = arith.constant 0 : i32
    return %arg0, %c0_i32 : i32, i32
  }
  func.func @transform_1(%arg0: i32) -> (i32, i32) {
    %c0_i32 = arith.constant 0 : i32
    %c0_i32_0 = arith.constant 0 : i32
    %c0_i32_1 = arith.constant 0 : i32
    return %c0_i32, %c0_i32_0 : i32, i32
  }
  func.func @transform_2(%arg0: i32) -> (i32, i32) {
    %c0_i32 = arith.constant 0 : i32
    %c0_i32_0 = arith.constant 0 : i32
    %c0_i32_1 = arith.constant 0 : i32
    return %c0_i32, %c0_i32_0 : i32, i32
  }
  func.func @transform_3(%arg0: i32) -> (i32, i32) {
    %c0_i32 = arith.constant 0 : i32
    %c0_i32_0 = arith.constant 0 : i32
    %c0_i32_1 = arith.constant 0 : i32
    return %c0_i32, %c0_i32_0 : i32, i32
  }
  func.func @transform_4(%arg0: i32) -> (i32, i32) {
    %c0_i32 = arith.constant 0 : i32
    %c0_i32_0 = arith.constant 0 : i32
    %c0_i32_1 = arith.constant 0 : i32
    return %c0_i32, %c0_i32_0 : i32, i32
  }
  func.func @transform_5(%arg0: i32) -> (i32, i32) {
    %c0_i32 = arith.constant 0 : i32
    %c0_i32_0 = arith.constant 0 : i32
    %c0_i32_1 = arith.constant 0 : i32
    return %c0_i32, %c0_i32_0 : i32, i32
  }
  func.func @transform_6(%arg0: i32) -> (i32, i32) {
    %c0_i32 = arith.constant 0 : i32
    %c0_i32_0 = arith.constant 0 : i32
    %c0_i32_1 = arith.constant 0 : i32
    return %c0_i32, %c0_i32_0 : i32, i32
  }
  func.func @transform_7(%arg0: i32) -> (i32, i32) {
    %c0_i32 = arith.constant 0 : i32
    %c0_i32_0 = arith.constant 0 : i32
    return %arg0, %c0_i32 : i32, i32
  }
  func.func @transform_8(%arg0: i32) -> (i32, i32) {
    %c0_i32 = arith.constant 0 : i32
    %c0_i32_0 = arith.constant 0 : i32
    return %arg0, %c0_i32 : i32, i32
  }
}

</mosaic_0001>

<bundles_post_ra>
// kernel: tpu_custom_call.1
= control target key start
LH: loop header
LB: loop body
LE: loop exit
PB: predicated region body
PF: predicated region fallthrough
CT: control target
= control target key end

     0   :  { %14 = vsyncpa [#allocation3], 0  ;;  %s768_s0 = inlined_call_operand.hbm [shape: f32[16,32], index: 0, kind: input, shape index: {}]   ;;  %s769_s1 = inlined_call_operand.hbm [shape: f32[32,256], index: 1, kind: input, shape index: {}]   ;;  %s770_s2 = inlined_call_operand.vmem [shape: f32[1,256], index: 2, kind: input, shape index: {}]   ;;  %s771_s3 = inlined_call_operand.hbm [shape: f32[128,256], index: 3, kind: input, shape index: {}]   ;;  %s772_s4 = inlined_call_operand.vmem [shape: f32[1,256], index: 4, kind: input, shape index: {}]   ;;  %s773_s5 = inlined_call_operand.hbm [shape: f32[256,256], index: 5, kind: input, shape index: {}]   ;;  %s774_s6 = inlined_call_operand.vmem [shape: f32[1,256], index: 6, kind: input, shape index: {}]   ;;  %s775_s7 = inlined_call_operand.hbm [shape: f32[16,256], index: 7, kind: output, shape index: {0}]   ;;  %s776_s8 = inlined_call_operand.vmem [shape: f32[16,1], index: 8, kind: output, shape index: {1}]  }
   0x1   :  { %15 = vsyncpa [#allocation6], 0 }
   0x2   :  { %16 = vsyncpa [#allocation9], 0 }
   0x3   :  { %17 = vsyncpa [#allocation4], 0  ;;  %s648_s27 = smov [#allocation5]  }
   0x4   :  { %s35_s28 = sshll.u32 %s648_s27, 4  ;;  %s36_s28 = int_to_ptr.vmem [resolvable:$true] %s35_s28 }
   0x5   :  { %s548_s29 = scalar_lea.vmem %s36_s28, 1024  ;;  %p553_p1 = scmp.lt.s32.totalorder %s36_s28, %s36_s28 }
   0x6   :  { %p549_p0 = scmp.ne.s32.totalorder %s36_s28, %s548_s29  ;;  %p554_p2 = scmp.lt.s32.totalorder %s548_s29, %s548_s29 }
   0x8   :  { %p555_p3 = por %p554_p2, %p553_p1 }
   0xa   :  { %p556_p4 = pnand %p555_p3, %p549_p0 }
   0xc   :  { %559 = shalt.err (!%p556_p4)
}
   0xd   :  { %s649_s30 = smov 256   ;;  %s650_s9 = smov 16  }
   0xe   :  { %41 = dma.hbm_to_vmem [thread:$0]  %s769_s1, 1024, %s36_s28, [#allocation6], %s649_s30, %s649_s30, %s650_s9  }
   0xf   :  { %s651_s12 = smov [#allocation2]  }
  0x10   :  { %s23_s13 = sshll.u32 %s651_s12, 4  ;;  %s24_s13 = int_to_ptr.vmem [resolvable:$true] %s23_s13 }
  0x11   :  { %s568_s14 = scalar_lea.vmem %s24_s13, 256  ;;  %p573_p6 = scmp.lt.s32.totalorder %s24_s13, %s24_s13 }
  0x12   :  { %p569_p5 = scmp.ne.s32.totalorder %s24_s13, %s568_s14  ;;  %p574_p7 = scmp.lt.s32.totalorder %s568_s14, %s568_s14 }
  0x14   :  { %p575_p8 = por %p574_p7, %p573_p6 }
  0x16   :  { %p576_p9 = pnand %p575_p8, %p569_p5 }
  0x18   :  { %579 = shalt.err (!%p576_p9)
}
  0x19   :  { %s652_s15 = smov 128   ;;  %s653_s16 = smov 8  }
  0x1a   :  { %29 = dma.hbm_to_vmem [thread:$0]  %s768_s0, 256, %s24_s13, [#allocation3], %s652_s15, %s652_s15, %s653_s16  }
  0x1b   :  { %s654_s19 = smov [#allocation7]   ;;  %s655_s21 = smov [#allocation8]  }
  0x1c   :  { %s49_s20 = sshll.u32 %s654_s19, 4  ;;  %s63_s1 = sshll.u32 %s655_s21, 4  ;;  %s50_s20 = int_to_ptr.vmem [resolvable:$true] %s49_s20  ;;  %s64_s1 = int_to_ptr.vmem [resolvable:$true] %s63_s1 }
  0x1d   :  { %s588_s22 = scalar_lea.vmem %s50_s20, 4096  ;;  %p593_p11 = scmp.lt.s32.totalorder %s50_s20, %s50_s20 }
  0x1e   :  { %p589_p10 = scmp.ne.s32.totalorder %s50_s20, %s588_s22  ;;  %p594_p12 = scmp.lt.s32.totalorder %s588_s22, %s588_s22 }
  0x20   :  { %p595_p13 = por %p594_p12, %p593_p11 }
  0x22   :  { %p596_p0 = pnand %p595_p13, %p589_p10 }
  0x24   :  { %599 = shalt.err (!%p596_p0)
}
  0x25   :  { %55 = dma.hbm_to_vmem [thread:$0]  %s771_s3, 4096, %s50_s20, [#allocation6], %s649_s30, %s649_s30, %s650_s9  }
  0x26   :  { %s608_s0 = scalar_lea.vmem %s64_s1, 8192  ;;  %p613_p2 = scmp.lt.s32.totalorder %s64_s1, %s64_s1 }
  0x27   :  { %p609_p1 = scmp.ne.s32.totalorder %s64_s1, %s608_s0  ;;  %p614_p3 = scmp.lt.s32.totalorder %s608_s0, %s608_s0 }
  0x29   :  { %p615_p4 = por %p614_p3, %p613_p2 }
  0x2b   :  { %p616_p5 = pnand %p615_p4, %p609_p1 }
  0x2d   :  { %619 = shalt.err (!%p616_p5)
}
  0x2e   :  { %69 = dma.hbm_to_vmem [thread:$0]  %s773_s5, 8192, %s64_s1, [#allocation9], %s649_s30, %s649_s30, %s650_s9  }
  0x2f   :  { %640 = dma.done.wait [#allocation3], 256  }
  0x30   :  { %641 = vsyncadd [#allocation3], 4294967040 }
  0x31   :  { %642 = dma.done.wait [#allocation6], 5120  }
  0x32   :  { %643 = vsyncadd [#allocation6], 4294962176 }
  0x33   :  { %644 = dma.done.wait [#allocation9], 8192  }
  0x34   :  { %645 = vsyncadd [#allocation9], 4294959104  ;;  %v656_v0 = vmov 0.0   ;;  %v93_v1 = vld [vmem:[#allocation5 + $0x38] sm:$0xff]  ;;  %v92_v2 = vld [vmem:[#allocation5 + $0x30] sm:$0xff]  ;;  %vm106_vm0 = vcmask 261120  }
  0x35   :  { %177 = vmatprep.mubr.f32.mxu1 %v656_v0  ;;  %v91_v3 = vld [vmem:[#allocation5 + $0x28] sm:$0xff]  ;;  %137 = vmatprep.subr.mxu1 %v93_v1  ;;  %v90_v4 = vld [vmem:[#allocation5 + $0x20] sm:$0xff]  ;;  %v89_v5 = vld [vmem:[#allocation5 + $0x18] sm:$0xff] }
  0x36   :  { %138 = vmatpush1.msra.mxu1 %v92_v2  ;;  %v88_v6 = vld [vmem:[#allocation5 + $0x10] sm:$0xff]  ;;  %v87_v7 = vld [vmem:[#allocation5 + $0x8] sm:$0xff]  ;;  %v86_v8 = vld [vmem:[#allocation5] sm:$0xff] }
  0x37   :  { %139 = vmatprep.subr.mxu1 %v91_v3  ;;  %v84_v9 = vld [vmem:[#allocation2] sm:$0xff]  ;;  %v221_v10 = vld [vmem:[#allocation7 + $0xf8] sm:$0xff]  ;;  %v219_v12 = vld [vmem:[#allocation7 + $0xe8] sm:$0xff] }
  0x38   :  { %140 = vmatpush1.msra.mxu1 %v90_v4  ;;  %v220_v11 = vld [vmem:[#allocation7 + $0xf0] sm:$0xff]  ;;  %v218_v13 = vld [vmem:[#allocation7 + $0xe0] sm:$0xff]  ;;  %v85_v14 = vld [vmem:[#allocation2 + $0x8] sm:$0xff] }
  0x39   :  { %141 = vmatprep.subr.mxu1 %v89_v5  ;;  %v217_v15 = vld [vmem:[#allocation7 + $0xd8] sm:$0xff]  ;;  %v216_v16 = vld [vmem:[#allocation7 + $0xd0] sm:$0xff]  ;;  %v215_v17 = vld [vmem:[#allocation7 + $0xc8] sm:$0xff] }
  0x3a   :  { %142 = vmatpush1.msra.mxu1 %v88_v6  ;;  %v214_v18 = vld [vmem:[#allocation7 + $0xc0] sm:$0xff]  ;;  %v213_v19 = vld [vmem:[#allocation7 + $0xb8] sm:$0xff]  ;;  %v212_v20 = vld [vmem:[#allocation7 + $0xb0] sm:$0xff] }
  0x3b   :  { %143 = vmatprep.subr.mxu1 %v87_v7  ;;  %v211_v21 = vld [vmem:[#allocation7 + $0xa8] sm:$0xff]  ;;  %v210_v22 = vld [vmem:[#allocation7 + $0xa0] sm:$0xff]  ;;  %v209_v23 = vld [vmem:[#allocation7 + $0x98] sm:$0xff] }
  0x3c   :  { %144 = vmatpush1.msra.mxu1 %v86_v8  ;;  %v208_v24 = vld [vmem:[#allocation7 + $0x90] sm:$0xff]  ;;  %v207_v25 = vld [vmem:[#allocation7 + $0x88] sm:$0xff]  ;;  %v206_v26 = vld [vmem:[#allocation7 + $0x80] sm:$0xff] }
  0x3d   :  { %512 = vmatmul.mubr.msk.f32.vlgmr.msra.gmra.mxu1 %vm106_vm0, %v84_v9  ;;  %234 = vmatprep.subr.mxu1 %v221_v10  ;;  %v205_v27 = vld [vmem:[#allocation7 + $0x78] sm:$0xff]  ;;  %v204_v28 = vld [vmem:[#allocation7 + $0x70] sm:$0xff]  ;;  %v203_v29 = vld [vmem:[#allocation7 + $0x68] sm:$0xff] }
  0x3e   :  { %183 = vmatprep.mubr.f32.mxu1 %v656_v0  ;;  %235 = vmatpush1.msra.mxu1 %v220_v11  ;;  %v202_v30 = vld [vmem:[#allocation7 + $0x60] sm:$0xff]  ;;  %v201_v31 = vld [vmem:[#allocation7 + $0x58] sm:$0xff]  ;;  %v200_v32 = vld [vmem:[#allocation7 + $0x50] sm:$0xff] }
  0x3f   :  { %236 = vmatprep.subr.mxu1 %v219_v12  ;;  %v199_v33 = vld [vmem:[#allocation7 + $0x48] sm:$0xff]  ;;  %v198_v34 = vld [vmem:[#allocation7 + $0x40] sm:$0xff]  ;;  %v197_v35 = vld [vmem:[#allocation7 + $0x38] sm:$0xff] }
  0x40   :  { %237 = vmatpush1.msra.mxu1 %v218_v13  ;;  %v196_v36 = vld [vmem:[#allocation7 + $0x30] sm:$0xff]  ;;  %v195_v37 = vld [vmem:[#allocation7 + $0x28] sm:$0xff]  ;;  %v194_v38 = vld [vmem:[#allocation7 + $0x20] sm:$0xff] }
  0x41   :  { %513 = vmatmul.mubr.msk.f32.gmra.mxu1 %vm106_vm0, %v85_v14  ;;  %238 = vmatprep.subr.mxu1 %v217_v15  ;;  %v193_v39 = vld [vmem:[#allocation7 + $0x18] sm:$0xff]  ;;  %v192_v40 = vld [vmem:[#allocation7 + $0x10] sm:$0xff]  ;;  %v191_v41 = vld [vmem:[#allocation7 + $0x8] sm:$0xff] }
  0x42   :  { %239 = vmatpush1.msra.mxu1 %v216_v16  ;;  %298 = vmatprep.mubr.f32.mxu1 %v656_v0  ;;  %v190_v42 = vld [vmem:[#allocation7] sm:$0xff]  ;;  %v346_v43 = vld [vmem:[#allocation8 + $0xf8] sm:$0xff]  ;;  %v345_v44 = vld [vmem:[#allocation8 + $0xf0] sm:$0xff] }
  0x43   :  { %240 = vmatprep.subr.mxu1 %v215_v17  ;;  %v344_v45 = vld [vmem:[#allocation8 + $0xe8] sm:$0xff]  ;;  %391 = vmatprep.subr.mxu0 %v346_v43  ;;  %v343_v46 = vld [vmem:[#allocation8 + $0xe0] sm:$0xff]  ;;  %v342_v47 = vld [vmem:[#allocation8 + $0xd8] sm:$0xff] }
  0x44   :  { %241 = vmatpush1.msra.mxu1 %v214_v18  ;;  %392 = vmatpush1.msra.mxu0 %v345_v44  ;;  %v341_v48 = vld [vmem:[#allocation8 + $0xd0] sm:$0xff]  ;;  %v340_v49 = vld [vmem:[#allocation8 + $0xc8] sm:$0xff]  ;;  %v339_v50 = vld [vmem:[#allocation8 + $0xc0] sm:$0xff] }
  0x45   :  { %242 = vmatprep.subr.mxu1 %v213_v19  ;;  %393 = vmatprep.subr.mxu0 %v344_v45  ;;  %v338_v51 = vld [vmem:[#allocation8 + $0xb8] sm:$0xff]  ;;  %v337_v52 = vld [vmem:[#allocation8 + $0xb0] sm:$0xff]  ;;  %v336_v53 = vld [vmem:[#allocation8 + $0xa8] sm:$0xff] }
  0x46   :  { %243 = vmatpush1.msra.mxu1 %v212_v20  ;;  %394 = vmatpush1.msra.mxu0 %v343_v46  ;;  %v335_v54 = vld [vmem:[#allocation8 + $0xa0] sm:$0xff]  ;;  %v334_v55 = vld [vmem:[#allocation8 + $0x98] sm:$0xff]  ;;  %v333_v56 = vld [vmem:[#allocation8 + $0x90] sm:$0xff] }
  0x47   :  { %244 = vmatprep.subr.mxu1 %v211_v21  ;;  %395 = vmatprep.subr.mxu0 %v342_v47  ;;  %v332_v57 = vld [vmem:[#allocation8 + $0x88] sm:$0xff]  ;;  %v331_v58 = vld [vmem:[#allocation8 + $0x80] sm:$0xff]  ;;  %v330_v59 = vld [vmem:[#allocation8 + $0x78] sm:$0xff] }
  0x48   :  { %245 = vmatpush1.msra.mxu1 %v210_v22  ;;  %396 = vmatpush1.msra.mxu0 %v341_v48  ;;  %v329_v60 = vld [vmem:[#allocation8 + $0x70] sm:$0xff]  ;;  %v328_v61 = vld [vmem:[#allocation8 + $0x68] sm:$0xff]  ;;  %v327_v62 = vld [vmem:[#allocation8 + $0x60] sm:$0xff] }
  0x49   :  { %246 = vmatprep.subr.mxu1 %v209_v23  ;;  %397 = vmatprep.subr.mxu0 %v340_v49  ;;  %v326_v63 = vld [vmem:[#allocation8 + $0x58] sm:$0xff]  ;;  %v325_v1 = vld [vmem:[#allocation8 + $0x50] sm:$0xff]  ;;  %v324_v2 = vld [vmem:[#allocation8 + $0x48] sm:$0xff] }
  0x4a   :  { %247 = vmatpush1.msra.mxu1 %v208_v24  ;;  %398 = vmatpush1.msra.mxu0 %v339_v50  ;;  %v323_v3 = vld [vmem:[#allocation8 + $0x40] sm:$0xff]  ;;  %v322_v4 = vld [vmem:[#allocation8 + $0x38] sm:$0xff]  ;;  %v321_v5 = vld [vmem:[#allocation8 + $0x30] sm:$0xff]  ;;  %v96_v24 = vlaneseq }
  0x4b   :  { %248 = vmatprep.subr.mxu1 %v207_v25  ;;  %399 = vmatprep.subr.mxu0 %v338_v51  ;;  %v320_v6 = vld [vmem:[#allocation8 + $0x28] sm:$0xff]  ;;  %v319_v7 = vld [vmem:[#allocation8 + $0x20] sm:$0xff]  ;;  %v318_v8 = vld [vmem:[#allocation8 + $0x18] sm:$0xff] }
  0x4c   :  { %249 = vmatpush1.msra.mxu1 %v206_v26  ;;  %400 = vmatpush1.msra.mxu0 %v337_v52  ;;  %v317_v9 = vld [vmem:[#allocation8 + $0x10] sm:$0xff]  ;;  %v316_v10 = vld [vmem:[#allocation8 + $0x8] sm:$0xff]  ;;  %v315_v11 = vld [vmem:[#allocation8] sm:$0xff]  ;;  %v97_v25 = vshrl.u32 %v96_v24, 7 }
  0x4d   :  { %250 = vmatprep.subr.mxu1 %v205_v27  ;;  %401 = vmatprep.subr.mxu0 %v336_v53  ;;  %v378_v12 = vld [vmem:[#allocation8 + $0x1f8] sm:$0xff]  ;;  %v377_v13 = vld [vmem:[#allocation8 + $0x1f0] sm:$0xff]  ;;  %v376_v14 = vld [vmem:[#allocation8 + $0x1e8] sm:$0xff] }
  0x4e   :  { %251 = vmatpush1.msra.mxu1 %v204_v28  ;;  %402 = vmatpush1.msra.mxu0 %v335_v54  ;;  %v375_v15 = vld [vmem:[#allocation8 + $0x1e0] sm:$0xff]  ;;  %v374_v16 = vld [vmem:[#allocation8 + $0x1d8] sm:$0xff]  ;;  %v373_v17 = vld [vmem:[#allocation8 + $0x1d0] sm:$0xff]  ;;  %v729_v26 = vsub.s32 0, %v97_v25  ;;  %v734_v28 = vsub.s32 1, %v97_v25 }
  0x4f   :  { %252 = vmatprep.subr.mxu1 %v203_v29  ;;  %403 = vmatprep.subr.mxu0 %v334_v55  ;;  %v372_v18 = vld [vmem:[#allocation8 + $0x1c8] sm:$0xff]  ;;  %v371_v19 = vld [vmem:[#allocation8 + $0x1c0] sm:$0xff]  ;;  %v370_v20 = vld [vmem:[#allocation8 + $0x1b8] sm:$0xff] }
  0x50   :  { %253 = vmatpush1.msra.mxu1 %v202_v30  ;;  %404 = vmatpush1.msra.mxu0 %v333_v56  ;;  %v369_v21 = vld [vmem:[#allocation8 + $0x1b0] sm:$0xff]  ;;  %v368_v22 = vld [vmem:[#allocation8 + $0x1a8] sm:$0xff]  ;;  %v367_v23 = vld [vmem:[#allocation8 + $0x1a0] sm:$0xff] }
  0x51   :  { %254 = vmatprep.subr.mxu1 %v201_v31  ;;  %405 = vmatprep.subr.mxu0 %v332_v57  ;;  %v94_v27 = vld [vmem:[%s770_s2] sm:$0x3]  ;;  %v360_v43 = vld [vmem:[#allocation8 + $0x168] sm:$0xff]  ;;  %v359_v44 = vld [vmem:[#allocation8 + $0x160] sm:$0xff] }
  0x52   :  { %255 = vmatpush1.msra.mxu1 %v200_v32  ;;  %406 = vmatpush1.msra.mxu0 %v331_v58  ;;  %v99_v29 = vrot.slane %v94_v27, %v729_v26  ;;  %v738_v30 = vrot.slane %v94_v27, %v734_v28  ;;  %v357_v45 = vld [vmem:[#allocation8 + $0x150] sm:$0xff]  ;;  %v356_v46 = vld [vmem:[#allocation8 + $0x148] sm:$0xff]  ;;  %v355_v47 = vld [vmem:[#allocation8 + $0x140] sm:$0xff] }
  0x53   :  { %256 = vmatprep.subr.mxu1 %v199_v33  ;;  %407 = vmatprep.subr.mxu0 %v330_v59  ;;  %v354_v48 = vld [vmem:[#allocation8 + $0x138] sm:$0xff]  ;;  %v353_v49 = vld [vmem:[#allocation8 + $0x130] sm:$0xff]  ;;  %v352_v50 = vld [vmem:[#allocation8 + $0x128] sm:$0xff] }
  0x54   :  { %257 = vmatpush1.msra.mxu1 %v198_v34  ;;  %408 = vmatpush1.msra.mxu0 %v329_v60  ;;  %v351_v51 = vld [vmem:[#allocation8 + $0x120] sm:$0xff]  ;;  %v350_v52 = vld [vmem:[#allocation8 + $0x118] sm:$0xff]  ;;  %v349_v53 = vld [vmem:[#allocation8 + $0x110] sm:$0xff] }
  0x55   :  { %258 = vmatprep.subr.mxu1 %v197_v35  ;;  %409 = vmatprep.subr.mxu0 %v328_v61  ;;  %v348_v54 = vld [vmem:[#allocation8 + $0x108] sm:$0xff]  ;;  %v347_v55 = vld [vmem:[#allocation8 + $0x100] sm:$0xff]  ;;  %v222_v56 = vld [vmem:[%s772_s4] sm:$0x3] }
  0x56   :  { %259 = vmatpush1.msra.mxu1 %v196_v36  ;;  %410 = vmatpush1.msra.mxu0 %v327_v62  ;;  %v227_v58 = vrot.slane %v222_v56, %v729_v26  ;;  %v231_v59 = vrot.slane %v222_v56, %v734_v28 }
  0x57   :  { %260 = vmatprep.subr.mxu1 %v195_v37  ;;  %411 = vmatprep.subr.mxu0 %v326_v63  ;;  %v366_v37 = vld [vmem:[#allocation8 + $0x198] sm:$0xff] }
  0x58   :  { %261 = vmatpush1.msra.mxu1 %v194_v38  ;;  %412 = vmatpush1.msra.mxu0 %v325_v1  ;;  %v365_v38 = vld [vmem:[#allocation8 + $0x190] sm:$0xff] }
  0x59   :  { %262 = vmatprep.subr.mxu1 %v193_v39  ;;  %413 = vmatprep.subr.mxu0 %v324_v2  ;;  %v364_v39 = vld [vmem:[#allocation8 + $0x188] sm:$0xff] }
  0x5a   :  { %263 = vmatpush1.msra.mxu1 %v192_v40  ;;  %414 = vmatpush1.msra.mxu0 %v323_v3  ;;  %v363_v40 = vld [vmem:[#allocation8 + $0x180] sm:$0xff] }
  0x5b   :  { %264 = vmatprep.subr.mxu1 %v191_v41  ;;  %415 = vmatprep.subr.mxu0 %v322_v4  ;;  %v362_v41 = vld [vmem:[#allocation8 + $0x178] sm:$0xff] }
  0x5c   :  { %265 = vmatpush1.msra.mxu1 %v190_v42  ;;  %416 = vmatpush1.msra.mxu0 %v321_v5  ;;  %v361_v42 = vld [vmem:[#allocation8 + $0x170] sm:$0xff] }
  0x5d   :  { %417 = vmatprep.subr.mxu0 %v320_v6 }
  0x5e   :  { %418 = vmatpush1.msra.mxu0 %v319_v7 }
  0x5f   :  { %419 = vmatprep.subr.mxu0 %v318_v8 }
  0x60   :  { %420 = vmatpush1.msra.mxu0 %v317_v9  ;;  %v379_v9 = vld [vmem:[%s774_s6] sm:$0x3]  ;;  %s657_s6 = smov [#allocation10]  }
  0x61   :  { %421 = vmatprep.subr.mxu0 %v316_v10  ;;  %v384_v10 = vrot.slane %v379_v9, %v729_v26  ;;  %s494_s29 = sshll.u32 %s657_s6, 4  ;;  %s495_s29 = int_to_ptr.vmem [resolvable:$true] %s494_s29 }
  0x62   :  { %422 = vmatpush1.msra.mxu0 %v315_v11  ;;  %s620_s10 = scalar_lea.vmem %s495_s29, 512  ;;  %p625_p7 = scmp.lt.s32.totalorder %s495_s29, %s495_s29 }
  0x63   :  { %423 = vmatprep.subr.mxu0 %v378_v12  ;;  %p621_p6 = scmp.ne.s32.totalorder %s495_s29, %s620_s10  ;;  %p626_p8 = scmp.lt.s32.totalorder %s620_s10, %s620_s10 }
  0x64   :  { %424 = vmatpush2.msra.mxu0 %v377_v13 }
  0x65   :  { %425 = vmatprep.subr.mxu0 %v376_v14  ;;  %p627_p9 = por %p626_p8, %p625_p7 }
  0x66   :  { %426 = vmatpush2.msra.mxu0 %v375_v15 }
  0x67   :  { %427 = vmatprep.subr.mxu0 %v374_v16  ;;  %p628_p10 = pnand %p627_p9, %p621_p6 }
  0x68   :  { %428 = vmatpush2.msra.mxu0 %v373_v17 }
  0x69   :  { %429 = vmatprep.subr.mxu0 %v372_v18 }
  0x6a   :  { %430 = vmatpush2.msra.mxu0 %v371_v19 }
  0x6b   :  { %431 = vmatprep.subr.mxu0 %v370_v20  ;;  %v388_v20 = vrot.slane %v379_v9, %v734_v28 }
  0x6c   :  { %432 = vmatpush2.msra.mxu0 %v369_v21 }
  0x6d   :  { %433 = vmatprep.subr.mxu0 %v368_v22 }
  0x6e   :  { %434 = vmatpush2.msra.mxu0 %v367_v23 }
  0x6f   :  { %435 = vmatprep.subr.mxu0 %v366_v37 }
  0x70   :  { %436 = vmatpush2.msra.mxu0 %v365_v38 }
  0x71   :  { %437 = vmatprep.subr.mxu0 %v364_v39 }
  0x72   :  { %438 = vmatpush2.msra.mxu0 %v363_v40 }
  0x73   :  { %439 = vmatprep.subr.mxu0 %v362_v41 }
  0x74   :  { %440 = vmatpush2.msra.mxu0 %v361_v42 }
  0x75   :  { %441 = vmatprep.subr.mxu0 %v360_v43 }
  0x76   :  { %442 = vmatpush2.msra.mxu0 %v359_v44 }
  0xfd   :  { %v179_v31 = vpop.f32.mrf.mxu1 }
  0xfe   :  { %v180_v32 = vadd.f32 %v179_v31, %v99_v29 }
  0xff   :  { %v181_v33 = vpop.f32.mrf.mxu1 }
 0x100   :  { %470 = vst [vmem:[#allocation10] sm:$0xff] %v180_v32  ;;  %v741_v34 = vadd.f32 %v181_v33, %v738_v30  ;;  %299 = vmatmul.mubr.f32.vlgmr.msra.gmra.mxu1 %v180_v32 }
 0x101   :  { %v185_v35 = vpop.f32.mrf.mxu1  ;;  %304 = vmatprep.mubr.f32.mxu1 %v656_v0  ;;  %v358_v0 = vld [vmem:[#allocation8 + $0x158] sm:$0xff] }
 0x102   :  { %v186_v36 = vadd.f32 %v185_v35, %v99_v29  ;;  %443 = vmatprep.subr.mxu0 %v358_v0 }
 0x103   :  { %444 = vmatpush2.msra.mxu0 %v357_v45  ;;  %v187_v57 = vpop.f32.mrf.mxu1 }
 0x104   :  { %471 = vst [vmem:[#allocation10 + $0x10] sm:$0xff] %v186_v36  ;;  %305 = vmatmul.mubr.f32.gmra.mxu1 %v186_v36  ;;  %445 = vmatprep.subr.mxu0 %v356_v46  ;;  %v188_v25 = vadd.f32 %v187_v57, %v738_v30 }
 0x105   :  { %446 = vmatpush2.msra.mxu0 %v355_v47 }
 0x106   :  { %447 = vmatprep.subr.mxu0 %v354_v48 }
 0x107   :  { %448 = vmatpush2.msra.mxu0 %v353_v49 }
 0x108   :  { %449 = vmatprep.subr.mxu0 %v352_v50 }
 0x109   :  { %450 = vmatpush2.msra.mxu0 %v351_v51 }
 0x10a   :  { %451 = vmatprep.subr.mxu0 %v350_v52 }
 0x10b   :  { %452 = vmatpush2.msra.mxu0 %v349_v53 }
 0x10c   :  { %453 = vmatprep.subr.mxu0 %v348_v54 }
 0x10d   :  { %454 = vmatpush2.msra.mxu0 %v347_v55 }
 0x1c0   :  { %v300_v60 = vpop.f32.mrf.mxu1 }
 0x1c1   :  { %v301_v61 = vadd.f32 %v300_v60, %v227_v58 }
 0x1c2   :  { %v302_v62 = vpop.f32.mrf.mxu1 }
 0x1c3   :  { %v303_v63 = vadd.f32 %v302_v62, %v231_v59 }
 0x1c4   :  { %v306_v1 = vpop.f32.mrf.mxu1 }
 0x1c5   :  { %524 = vtanh.f32 %v303_v63  ;;  %v307_v2 = vadd.f32 %v306_v1, %v227_v58 }
 0x1c6   :  { %526 = vtanh.f32 %v301_v61  ;;  %v308_v3 = vpop.f32.mrf.mxu1 }
 0x1c7   :  { %v309_v4 = vadd.f32 %v308_v3, %v231_v59 }
 0x1c9   :  { %528 = vtanh.f32 %v309_v4 }
 0x1ca   :  { %530 = vtanh.f32 %v307_v2 }
 0x1d2   :  { %v525_v5 = vpop.eup %524 }
 0x1d3   :  { %v527_v6 = vpop.eup %526  ;;  %455 = vmatprep.mubr.f32.mxu0 %v525_v5 }
 0x1d4   :  { %456 = vmatmul.mubr.f32.vlgmr.msra.gmra.mxu0 %v527_v6 }
 0x1d6   :  { %v529_v7 = vpop.eup %528 }
 0x1d7   :  { %v531_v8 = vpop.eup %530  ;;  %461 = vmatprep.mubr.f32.mxu0 %v529_v7 }
 0x1d8   :  { %462 = vmatmul.mubr.f32.gmra.mxu0 %v531_v8 }
 0x294   :  { %v457_v11 = vpop.f32.mrf.mxu0 }
 0x295   :  { %v458_v12 = vadd.f32 %v457_v11, %v384_v10 }
 0x296   :  { %v459_v13 = vpop.f32.mrf.mxu0 }
 0x297   :  { %532 = vtanh.f32 %v458_v12  ;;  %v460_v22 = vadd.f32 %v459_v13, %v388_v20 }
 0x298   :  { %v463_v14 = vpop.f32.mrf.mxu0 }
 0x299   :  { %v464_v15 = vadd.f32 %v463_v14, %v384_v10 }
 0x29a   :  { %v465_v24 = vpop.f32.mrf.mxu0 }
 0x29b   :  { %534 = vtanh.f32 %v464_v15  ;;  %v466_v29 = vadd.f32 %v465_v24, %v388_v20 }
 0x2a4   :  { %v533_v16 = vpop.eup %532 }
 0x2a5   :  { %v472_v17 = vmul.f32 1.442695, %v533_v16  ;;  %482 = vadd.xlane.f32.xlu0 %v533_v16 }
 0x2a7   :  { %536 = vpow2.f32 %v472_v17 }
 0x2a8   :  { %v535_v18 = vpop.eup %534 }
 0x2a9   :  { %v474_v19 = vmul.f32 1.442695, %v535_v18  ;;  %484 = vadd.xlane.f32.xlu0 %v535_v18 }
 0x2ab   :  { %538 = vpow2.f32 %v474_v19 }
 0x2b4   :  { %v537_v21 = vpop.eup %536 }
 0x2b5   :  { %v476_v23 = vmul.f32 %v537_v21, %v741_v34 }
 0x2b7   :  { %v478_v26 = vadd.f32 %v476_v23, %v460_v22 }
 0x2b8   :  { %v539_v27 = vpop.eup %538 }
 0x2b9   :  { %480 = vst [vmem:[#allocation10 + $0x8] sm:$0xff] %v478_v26  ;;  %v477_v31 = vmul.f32 %v539_v27, %v188_v25 }
 0x2bb   :  { %v479_v32 = vadd.f32 %v477_v31, %v466_v29 }
 0x2bd   :  { %481 = vst [vmem:[#allocation10 + $0x18] sm:$0xff] %v479_v32 }
 0x2be   :  { %631 = shalt.err (!%p628_p10)
}
 0x2bf   :  { %500 = dma.vmem_to_hbm [thread:$0]  %s495_s29, 512, %s775_s7, [#allocation4], %s649_s30, %s649_s30, %s650_s9   ;;  %vm486_vm1 = vcmask 7168  }
 0x32e   :  { %v483_v28 = vpop.xlane.xlu0 %482 }
 0x32f   :  { %487 = vst.msk [vmem:[%s776_s8] sm:$0xff] %vm486_vm1, %v483_v28 }
 0x332   :  { %v485_v30 = vpop.xlane.xlu0 %484 }
 0x333   :  { %488 = vst.msk [vmem:[%s776_s8 + $0x8] sm:$0xff] %vm486_vm1, %v485_v30 }
 0x334   :  { %646 = dma.done.wait [#allocation4], 512  }
 0x335   :  { %647 = vsyncadd [#allocation4], 4294966784 }
 0x336   :  { %508 = vsyncpa [#allocation3], 1 }
 0x337   :  { %509 = vsyncpa [#allocation6], 1 }
 0x338   :  { %510 = vsyncpa [#allocation9], 1 }
 0x339   :  { %511 = vsyncpa [#allocation4], 1 }

</bundles_post_ra>
